<compile_context>
chip_gen: v6e
topology: v6e:2x2x1
jax: 0.10.0
libtpu: 0.0.40
codegen_flags: <defaults>
</compile_context>

<pallas_src>
import math
import numpy as np
import jax
import jax.numpy as jnp
from jax.experimental import pallas as pl
from jax.experimental.pallas import tpu as pltpu


# ----------------------------------------------------------------------------
# Deterministic parameter construction (mirrors NeuralNetwork.__init__)
# ----------------------------------------------------------------------------
def build_weights(d: int, L: int = 2, m: int = 20, random_seed: int = 12345):
    assert d % 2 == 0 and m % 2 == 0, "d and m must be even (module assumption)"
    assert L >= 2, "forward kernel assumes at least 2 layers"
    np.random.seed(random_seed)
    w_for_1 = np.random.randn(d // 2, m // 2) * np.sqrt(4.0 / m)
    w_for_1_to_Lminus1 = np.random.randn(m // 2, m // 2) * np.sqrt(4.0 / m)
    w_for_L = np.random.randn(m // 2) * np.sqrt(2.0 / m)

    weights = []
    for layer_index in range(1, L + 1):
        if layer_index == 1:
            W = np.zeros((d, m))
            W[0 : d // 2, 0 : m // 2] = w_for_1
            W[d // 2 :, m // 2 :] = w_for_1
        elif layer_index == L:
            W = np.zeros((m, 1))
            W[0 : m // 2, 0] = w_for_L
            W[m // 2 :, 0] = -w_for_L
        else:
            W = np.zeros((m, m))
            W[0 : m // 2, 0 : m // 2] = w_for_1_to_Lminus1
            W[m // 2 :, m // 2 :] = w_for_1_to_Lminus1
        weights.append(np.asarray(W, dtype=np.float32))
    return weights


# ----------------------------------------------------------------------------
# Host-side preparation: lane-aligned hidden weights, sqrt(m) folded into W_L.
# No padding of the input feature dim d (W1 stays (d, m_pad)).
# ----------------------------------------------------------------------------
def _round_up(n: int, mult: int) -> int:
    return ((n + mult - 1) // mult) * mult


def prepare_padded_params(weights, d: int, m: int):
    """Pad hidden widths to a lane multiple and fold sqrt(m) into W_L.

    Returns (padded_weights, m_pad).  The last weight is a (1, m_pad) row so
    the kernel's final layer is a VPU multiply + lane reduction.
    """
    L = len(weights)
    m_pad = max(_round_up(m, 128), 128)
    sqrt_m = math.sqrt(m)

    padded = []
    for i, w in enumerate(weights):
        w = np.asarray(w, dtype=np.float32)
        if i == 0:
            Wp = np.zeros((d, m_pad), dtype=np.float32)
            Wp[:, :m] = w
        elif i == L - 1:
            Wp = np.zeros((1, m_pad), dtype=np.float32)
            Wp[0, :m] = w[:, 0] * sqrt_m  # fold the final sqrt(m) scale in
        else:
            Wp = np.zeros((m_pad, m_pad), dtype=np.float32)
            Wp[:m, :m] = w
        padded.append(jnp.asarray(Wp))
    return padded, m_pad


# ----------------------------------------------------------------------------
# Generation-aware batch-tile selection
# ----------------------------------------------------------------------------
def _tensorcores_per_chip() -> int:
    """2 for dual-TensorCore chips (v7x), 1 otherwise (v5e/v6e or unknown)."""
    try:
        kind = jax.devices()[0].device_kind.lower()
    except Exception:
        return 1
    return 2 if "v7" in kind else 1


def _select_batch_tile(B: int) -> int:
    """Batch rows per grid step (always a multiple of 128)."""
    b128 = max(_round_up(max(B, 1), 128), 128)
    if _tensorcores_per_chip() >= 2:
        # v7x: keep >= 2 parallel tiles when the batch allows so both
        # TensorCores get work.
        return 128
    # Single TC (v5e/v6e): grid steps are a serial loop with ~0.35us fixed
    # overhead each -> collapse the grid.  Cap the tile; the kernel loops over
    # 128-row strips internally so vreg pressure stays bounded.
    return min(b128, 512)


# ----------------------------------------------------------------------------
# Pallas kernel: fused L-layer MLP, lane-packed output rows
# ----------------------------------------------------------------------------
def make_mlp_kernel(num_layers: int, n_strips: int):
    def mlp_kernel(x_ref, *refs):
        # refs = (w1_ref, ..., wL_ref, out_ref)
        w_refs = refs[:num_layers]
        out_ref = refs[num_layers]            # (n_strips, 128)

        wl = w_refs[num_layers - 1][...]      # (1, m_pad), sqrt(m) folded in

        # Process the batch tile in 128-row strips; each strip emits one
        # lane-dense 128-wide output row (unmasked vst).
        for s in range(n_strips):
            h = x_ref[pl.ds(s * 128, 128), :]             # (128, d) f32
            # Layers 1 .. L-1: MXU matmul + ReLU
            for i in range(num_layers - 1):
                h = jnp.dot(h, w_refs[i][...],
                            preferred_element_type=jnp.float32)
                h = jnp.maximum(h, 0.0)
            # Layer L: VPU multiply + XLU lane reduction, then one small XLU
            # transpose to pack the 128 batch rows into 128 lanes.
            contrib = h * wl                               # (128, m_pad)
            red = jnp.sum(contrib, axis=-1, keepdims=True)  # (128, 1)
            out_ref[pl.ds(s, 1), :] = jnp.transpose(red)    # (1, 128)

    return mlp_kernel


def neural_network_forward(x: jnp.ndarray, padded_weights, d: int,
                           m_pad: int) -> jnp.ndarray:
    """Pallas-backed forward pass equivalent to NeuralNetwork.forward.

    `padded_weights` come from prepare_padded_params (sqrt(m) already folded).
    Returns an array of shape (B, 1).
    """
    if x.ndim == 1:
        x = x[None, :]
    assert x.shape[1] == d, "Dimension doesn't match"

    B = x.shape[0]
    L = len(padded_weights)

    TB = _select_batch_tile(B)
    B_pad = _round_up(B, TB)
    n_strips = TB // 128
    num_tiles = B_pad // TB

    # Only the batch dimension is padded (feature dim stays d); zero rows are
    # inert and skipped by the final reshape/slice.
    x = x.astype(jnp.float32)
    if B_pad != B:
        x = jnp.pad(x, ((0, B_pad - B), (0, 0)))

    in_specs = [pl.BlockSpec((TB, d), lambda i: (i, 0))]
    for wp in padded_weights:
        in_specs.append(pl.BlockSpec(wp.shape, lambda i: (0, 0)))

    # Lane-packed output: row (tile, strip) holds the outputs of batch rows
    # tile*TB + strip*128 .. +127.
    out_specs = pl.BlockSpec((None, n_strips, 128), lambda i: (i, 0, 0))

    out_pad = pl.pallas_call(
        make_mlp_kernel(L, n_strips),
        out_shape=jax.ShapeDtypeStruct((num_tiles, n_strips, 128), jnp.float32),
        grid=(num_tiles,),
        in_specs=in_specs,
        out_specs=out_specs,
        compiler_params=pltpu.CompilerParams(
            dimension_semantics=("parallel",),
        ),
    )(x, *padded_weights)

    # Row-major flatten restores batch order exactly.
    return out_pad.reshape(-1)[:B].reshape(B, 1)


# ----------------------------------------------------------------------------
# Pure-JAX reference for correctness checking (uses the unpadded weights).
# ----------------------------------------------------------------------------
def reference_forward(x, weights, m):
    if x.ndim == 1:
        x = x[None, :]
    h = jnp.asarray(x, dtype=jnp.float32)
    for i, w in enumerate(weights):
        h = h @ jnp.asarray(w)
        if i != len(weights) - 1:
            h = jnp.maximum(h, 0.0)
    return h * math.sqrt(m)


if __name__ == "__main__":
    # Module-consistent shapes: d = input dim, m = layer width, L = 2.
    # Batch = all arms/contexts evaluated in ONE pallas_call (grid over batch).
    d, L, m = 8, 2, 20
    batch = 256  # many arms batched to amortize launch/DMA overhead

    raw_weights = build_weights(d=d, L=L, m=m, random_seed=12345)
    padded_weights, m_pad = prepare_padded_params(raw_weights, d, m)

    key = jax.random.PRNGKey(0)
    x = jax.random.normal(key, (batch, d), dtype=jnp.float32)

    out = neural_network_forward(x, padded_weights, d, m_pad)
    out = jax.block_until_ready(out)

    ref = reference_forward(x, raw_weights, m)
    assert out.shape == (batch, 1), f"unexpected output shape {out.shape}"
    ok = np.allclose(np.asarray(out), np.asarray(ref), rtol=1e-5, atol=1e-5)
    assert ok, "Pallas kernel output mismatch vs reference"

    print("KERNEL_OK")
</pallas_src>

<mosaic_0001>
module attributes {stable_mosaic.version = 11 : i64} {
  func.func @mlp_kernel(%arg0: i32, %arg1: memref<256x8xf32, #tpu.memory_space<vmem>>, %arg2: memref<8x128xf32, #tpu.memory_space<vmem>>, %arg3: memref<1x128xf32, #tpu.memory_space<vmem>>, %arg4: memref<1x2x128xf32, #tpu.memory_space<vmem>>) attributes {dimension_semantics = [#tpu.dimension_semantics<parallel>], iteration_bounds = array<i64: 1>, scalar_prefetch = 0 : i64, scratch_operands = 0 : i64, tpu.core_type = #tpu.core_type<tc>, window_params = [{transform_indices = @transform_0, window_bounds = array<i64: 256, 8>}, {pipeline_mode = #tpu.pipeline_mode<synchronous>, transform_indices = @transform_1, window_bounds = array<i64: 8, 128>}, {pipeline_mode = #tpu.pipeline_mode<synchronous>, transform_indices = @transform_2, window_bounds = array<i64: 1, 128>}, {transform_indices = @transform_3, window_bounds = array<i64: 1, 2, 128>}]} {
    %c0 = arith.constant 0 : index
    %c0_0 = arith.constant 0 : index
    %0 = vector.load %arg3[%c0, %c0_0] : memref<1x128xf32, #tpu.memory_space<vmem>>, vector<1x128xf32>
    %c0_1 = arith.constant 0 : index
    %c0_2 = arith.constant 0 : index
    %1 = vector.load %arg1[%c0_1, %c0_2] : memref<256x8xf32, #tpu.memory_space<vmem>>, vector<128x8xf32>
    %c0_3 = arith.constant 0 : index
    %c0_4 = arith.constant 0 : index
    %2 = vector.load %arg2[%c0_3, %c0_4] : memref<8x128xf32, #tpu.memory_space<vmem>>, vector<8x128xf32>
    %cst = arith.constant dense<0.000000e+00> : vector<128x128xf32>
    %3 = tpu.matmul %1, %2, %cst {dimension_numbers = #tpu.dot_dimension_numbers<[1], [0], [0], [1], [0, 0, 1, 1], [], []>} : vector<128x8xf32>, vector<8x128xf32>, vector<128x128xf32> -> vector<128x128xf32>
    %cst_5 = arith.constant 0.000000e+00 : f32
    %4 = vector.broadcast %cst_5 : f32 to vector<128x128xf32>
    %5 = arith.maximumf %3, %4 : vector<128x128xf32>
    %6 = vector.broadcast %0 : vector<1x128xf32> to vector<128x128xf32>
    %7 = arith.mulf %5, %6 : vector<128x128xf32>
    %cst_6 = arith.constant dense<0.000000e+00> : vector<128xf32>
    %8 = vector.multi_reduction <add>, %7, %cst_6 [1] : vector<128x128xf32> to vector<128xf32>
    %9 = vector.shape_cast %8 : vector<128xf32> to vector<128x1xf32>
    %10 = tpu.transpose %9, [1, 0] : vector<128x1xf32> -> vector<1x128xf32>
    %c0_7 = arith.constant 0 : index
    %c0_8 = arith.constant 0 : index
    %c0_9 = arith.constant 0 : index
    %11 = vector.load %arg4[%c0_7, %c0_8, %c0_9] : memref<1x2x128xf32, #tpu.memory_space<vmem>>, vector<1x1x128xf32>
    %12 = vector.shape_cast %11 : vector<1x1x128xf32> to vector<1x128xf32>
    %13 = vector.shape_cast %10 : vector<1x128xf32> to vector<1x1x128xf32>
    tpu.vector_store %arg4[%c0_7, %c0_8, %c0_9], %13 {strides = array<i32>} : memref<1x2x128xf32, #tpu.memory_space<vmem>>, vector<1x1x128xf32>,
    %c128 = arith.constant 128 : index
    %c0_10 = arith.constant 0 : index
    %14 = vector.load %arg1[%c128, %c0_10] : memref<256x8xf32, #tpu.memory_space<vmem>>, vector<128x8xf32>
    %c0_11 = arith.constant 0 : index
    %c0_12 = arith.constant 0 : index
    %15 = vector.load %arg2[%c0_11, %c0_12] : memref<8x128xf32, #tpu.memory_space<vmem>>, vector<8x128xf32>
    %cst_13 = arith.constant dense<0.000000e+00> : vector<128x128xf32>
    %16 = tpu.matmul %14, %15, %cst_13 {dimension_numbers = #tpu.dot_dimension_numbers<[1], [0], [0], [1], [0, 0, 1, 1], [], []>} : vector<128x8xf32>, vector<8x128xf32>, vector<128x128xf32> -> vector<128x128xf32>
    %cst_14 = arith.constant 0.000000e+00 : f32
    %17 = vector.broadcast %cst_14 : f32 to vector<128x128xf32>
    %18 = arith.maximumf %16, %17 : vector<128x128xf32>
    %19 = vector.broadcast %0 : vector<1x128xf32> to vector<128x128xf32>
    %20 = arith.mulf %18, %19 : vector<128x128xf32>
    %cst_15 = arith.constant dense<0.000000e+00> : vector<128xf32>
    %21 = vector.multi_reduction <add>, %20, %cst_15 [1] : vector<128x128xf32> to vector<128xf32>
    %22 = vector.shape_cast %21 : vector<128xf32> to vector<128x1xf32>
    %23 = tpu.transpose %22, [1, 0] : vector<128x1xf32> -> vector<1x128xf32>
    %c0_16 = arith.constant 0 : index
    %c1 = arith.constant 1 : index
    %c0_17 = arith.constant 0 : index
    %24 = vector.load %arg4[%c0_16, %c1, %c0_17] : memref<1x2x128xf32, #tpu.memory_space<vmem>>, vector<1x1x128xf32>
    %25 = vector.shape_cast %24 : vector<1x1x128xf32> to vector<1x128xf32>
    %26 = vector.shape_cast %23 : vector<1x128xf32> to vector<1x1x128xf32>
    tpu.vector_store %arg4[%c0_16, %c1, %c0_17], %26 {strides = array<i32>} : memref<1x2x128xf32, #tpu.memory_space<vmem>>, vector<1x1x128xf32>,
    return
  }
  func.func @transform_0(%arg0: i32) -> (i32, i32) {
    %c0_i32 = arith.constant 0 : i32
    %c0_i32_0 = arith.constant 0 : i32
    return %arg0, %c0_i32 : i32, i32
  }
  func.func @transform_1(%arg0: i32) -> (i32, i32) {
    %c0_i32 = arith.constant 0 : i32
    %c0_i32_0 = arith.constant 0 : i32
    %c0_i32_1 = arith.constant 0 : i32
    return %c0_i32, %c0_i32_0 : i32, i32
  }
  func.func @transform_2(%arg0: i32) -> (i32, i32) {
    %c0_i32 = arith.constant 0 : i32
    %c0_i32_0 = arith.constant 0 : i32
    %c0_i32_1 = arith.constant 0 : i32
    return %c0_i32, %c0_i32_0 : i32, i32
  }
  func.func @transform_3(%arg0: i32) -> (i32, i32, i32) {
    %c0_i32 = arith.constant 0 : i32
    %c0_i32_0 = arith.constant 0 : i32
    %c0_i32_1 = arith.constant 0 : i32
    return %arg0, %c0_i32, %c0_i32_0 : i32, i32, i32
  }
}

</mosaic_0001>

<bundles_post_ra>
// kernel: tpu_custom_call.1
= control target key start
LH: loop header
LB: loop body
LE: loop exit
PB: predicated region body
PF: predicated region fallthrough
CT: control target
= control target key end

     0   :  { %vm33_vm0 = vcmask 64512   ;;  %s985_s0 = inlined_call_operand.vmem [shape: f32[256,8], index: 0, kind: input, shape index: {}]   ;;  %s986_s1 = inlined_call_operand.vmem [shape: f32[8,128], index: 1, kind: input, shape index: {}]   ;;  %s987_s2 = inlined_call_operand.vmem [shape: f32[1,128], index: 2, kind: input, shape index: {}]   ;;  %s988_s3 = inlined_call_operand.hbm [shape: f32[1,2,128], index: 3, kind: output, shape index: {}]  }
   0x1   :  { %v32_v0 = vld [vmem:[%s986_s1] sm:$0xff]  ;;  %v17_v3 = vld [vmem:[%s985_s0 + $0x8] sm:$0xff]  ;;  %v18_v5 = vld [vmem:[%s985_s0 + $0x10] sm:$0xff] }
   0x2   :  { %v16_v1 = vld [vmem:[%s985_s0] sm:$0xff]  ;;  %718 = vmatprep.subr.mxu0 %v32_v0  ;;  %744 = vmatprep.subr.mxu1 %v32_v0  ;;  %v331_v4 = vld [vmem:[%s985_s0 + $0x88] sm:$0xff]  ;;  %v332_v6 = vld [vmem:[%s985_s0 + $0x90] sm:$0xff] }
   0x3   :  { %v330_v2 = vld [vmem:[%s985_s0 + $0x80] sm:$0xff]  ;;  %719 = vmatpush3.msra.mxu0 %v32_v0  ;;  %720 = vmatprep.mubr.msk.f32.mxu0 %vm33_vm0, %v16_v1  ;;  %v19_v7 = vld [vmem:[%s985_s0 + $0x18] sm:$0xff]  ;;  %v21_v11 = vld [vmem:[%s985_s0 + $0x28] sm:$0xff] }
   0x4   :  { %745 = vmatpush3.msra.mxu1 %v32_v0  ;;  %746 = vmatprep.mubr.msk.f32.mxu1 %vm33_vm0, %v330_v2  ;;  %v333_v8 = vld [vmem:[%s985_s0 + $0x98] sm:$0xff]  ;;  %v20_v9 = vld [vmem:[%s985_s0 + $0x20] sm:$0xff]  ;;  %v335_v12 = vld [vmem:[%s985_s0 + $0xa8] sm:$0xff] }
   0x5   :  { %721 = vmatmul.mubr.msk.f32.vlgmr.msra.gmra.mxu0 %vm33_vm0, %v17_v3  ;;  %747 = vmatmul.mubr.msk.f32.vlgmr.msra.gmra.mxu1 %vm33_vm0, %v331_v4  ;;  %v334_v10 = vld [vmem:[%s985_s0 + $0xa0] sm:$0xff]  ;;  %v22_v13 = vld [vmem:[%s985_s0 + $0x30] sm:$0xff] }
   0x6   :  { %723 = vmatprep.mubr.msk.f32.mxu0 %vm33_vm0, %v18_v5  ;;  %749 = vmatprep.mubr.msk.f32.mxu1 %vm33_vm0, %v332_v6  ;;  %v336_v14 = vld [vmem:[%s985_s0 + $0xb0] sm:$0xff] }
   0x9   :  { %724 = vmatmul.mubr.msk.f32.gmra.mxu0 %vm33_vm0, %v19_v7  ;;  %750 = vmatmul.mubr.msk.f32.gmra.mxu1 %vm33_vm0, %v333_v8 }
   0xa   :  { %726 = vmatprep.mubr.msk.f32.mxu0 %vm33_vm0, %v20_v9  ;;  %752 = vmatprep.mubr.msk.f32.mxu1 %vm33_vm0, %v334_v10 }
   0xb   :  { %8 = vsyncpa [#allocation3], 0  ;;  %v23_v15 = vld [vmem:[%s985_s0 + $0x38] sm:$0xff]  ;;  %v24_v17 = vld [vmem:[%s985_s0 + $0x40] sm:$0xff] }
   0xc   :  { %v337_v16 = vld [vmem:[%s985_s0 + $0xb8] sm:$0xff]  ;;  %v338_v18 = vld [vmem:[%s985_s0 + $0xc0] sm:$0xff]  ;;  %v25_v19 = vld [vmem:[%s985_s0 + $0x48] sm:$0xff] }
   0xd   :  { %727 = vmatmul.mubr.msk.f32.gmra.mxu0 %vm33_vm0, %v21_v11  ;;  %753 = vmatmul.mubr.msk.f32.gmra.mxu1 %vm33_vm0, %v335_v12  ;;  %v339_v20 = vld [vmem:[%s985_s0 + $0xc8] sm:$0xff]  ;;  %v26_v21 = vld [vmem:[%s985_s0 + $0x50] sm:$0xff]  ;;  %v27_v23 = vld [vmem:[%s985_s0 + $0x58] sm:$0xff] }
   0xe   :  { %729 = vmatprep.mubr.msk.f32.mxu0 %vm33_vm0, %v22_v13  ;;  %755 = vmatprep.mubr.msk.f32.mxu1 %vm33_vm0, %v336_v14  ;;  %v340_v22 = vld [vmem:[%s985_s0 + $0xd0] sm:$0xff]  ;;  %v341_v24 = vld [vmem:[%s985_s0 + $0xd8] sm:$0xff]  ;;  %v28_v25 = vld [vmem:[%s985_s0 + $0x60] sm:$0xff] }
   0xf   :  { %v342_v26 = vld [vmem:[%s985_s0 + $0xe0] sm:$0xff]  ;;  %v29_v27 = vld [vmem:[%s985_s0 + $0x68] sm:$0xff]  ;;  %v30_v29 = vld [vmem:[%s985_s0 + $0x70] sm:$0xff] }
  0x10   :  { %v343_v28 = vld [vmem:[%s985_s0 + $0xe8] sm:$0xff]  ;;  %v344_v30 = vld [vmem:[%s985_s0 + $0xf0] sm:$0xff]  ;;  %v31_v31 = vld [vmem:[%s985_s0 + $0x78] sm:$0xff] }
  0x11   :  { %730 = vmatmul.mubr.msk.f32.gmra.mxu0 %vm33_vm0, %v23_v15  ;;  %756 = vmatmul.mubr.msk.f32.gmra.mxu1 %vm33_vm0, %v337_v16  ;;  %v345_v32 = vld [vmem:[%s985_s0 + $0xf8] sm:$0xff]  ;;  %v948_v35 = vld [vmem:[%s987_s2] ss:$0 sm:$0xff]  ;;  %s793_s0 = smov [#allocation2]  }
  0x12   :  { %732 = vmatprep.mubr.msk.f32.mxu0 %vm33_vm0, %v24_v17  ;;  %758 = vmatprep.mubr.msk.f32.mxu1 %vm33_vm0, %v338_v18  ;;  %s643_s2 = sshll.u32 %s793_s0, 4  ;;  %s644_s2 = int_to_ptr.vmem [resolvable:$true] %s643_s2 }
  0x13   :  { %s771_s23 = scalar_lea.vmem %s644_s2, 32  ;;  %p776_p1 = scmp.lt.s32.totalorder %s644_s2, %s644_s2 }
  0x14   :  { %p772_p0 = scmp.ne.s32.totalorder %s644_s2, %s771_s23  ;;  %p777_p2 = scmp.lt.s32.totalorder %s771_s23, %s771_s23 }
  0x15   :  { %733 = vmatmul.mubr.msk.f32.gmra.mxu0 %vm33_vm0, %v25_v19  ;;  %759 = vmatmul.mubr.msk.f32.gmra.mxu1 %vm33_vm0, %v339_v20 }
  0x16   :  { %735 = vmatprep.mubr.msk.f32.mxu0 %vm33_vm0, %v26_v21  ;;  %761 = vmatprep.mubr.msk.f32.mxu1 %vm33_vm0, %v340_v22  ;;  %p778_p3 = por %p777_p2, %p776_p1 }
  0x18   :  { %p779_p4 = pnand %p778_p3, %p772_p0 }
  0x19   :  { %736 = vmatmul.mubr.msk.f32.gmra.mxu0 %vm33_vm0, %v27_v23  ;;  %762 = vmatmul.mubr.msk.f32.gmra.mxu1 %vm33_vm0, %v341_v24 }
  0x1a   :  { %738 = vmatprep.mubr.msk.f32.mxu0 %vm33_vm0, %v28_v25  ;;  %764 = vmatprep.mubr.msk.f32.mxu1 %vm33_vm0, %v342_v26 }
  0x1d   :  { %739 = vmatmul.mubr.msk.f32.gmra.mxu0 %vm33_vm0, %v29_v27  ;;  %765 = vmatmul.mubr.msk.f32.gmra.mxu1 %vm33_vm0, %v343_v28 }
  0x1e   :  { %741 = vmatprep.mubr.msk.f32.mxu0 %vm33_vm0, %v30_v29  ;;  %767 = vmatprep.mubr.msk.f32.mxu1 %vm33_vm0, %v344_v30 }
  0x21   :  { %742 = vmatmul.mubr.msk.f32.gmra.mxu0 %vm33_vm0, %v31_v31  ;;  %768 = vmatmul.mubr.msk.f32.gmra.mxu1 %vm33_vm0, %v345_v32 }
  0xc5   :  { %v722_v33 = vpop.f32.mrf.mxu0  ;;  %v748_v34 = vpop.f32.mrf.mxu1 }
  0xc6   :  { %v228_v36 = vmax.f32 %v722_v33, 0.0  ;;  %v541_v37 = vmax.f32 %v748_v34, 0.0 }
  0xc7   :  { %v461_v38 = vpop.f32.mrf.mxu1  ;;  %v148_v39 = vpop.f32.mrf.mxu0 }
  0xc8   :  { %v540_v40 = vmax.f32 %v461_v38, 0.0  ;;  %v227_v41 = vmax.f32 %v148_v39, 0.0  ;;  %v557_v42 = vmul.f32 %v948_v35, %v541_v37  ;;  %v250_v43 = vmul.f32 %v948_v35, %v228_v36 }
  0xc9   :  { %v725_v44 = vpop.f32.mrf.mxu0  ;;  %v751_v49 = vpop.f32.mrf.mxu1 }
  0xca   :  { %574 = vadd.xlane.f32.xlu1 %v557_v42  ;;  %267 = vadd.xlane.f32.xlu0 %v250_v43  ;;  %v230_v45 = vmax.f32 %v725_v44, 0.0  ;;  %v249_v46 = vmul.f32 %v948_v35, %v227_v41  ;;  %v556_v48 = vmul.f32 %v948_v35, %v540_v40  ;;  %v543_v51 = vmax.f32 %v751_v49, 0.0 }
  0xcb   :  { %v158_v47 = vpop.f32.mrf.mxu0  ;;  %v471_v61 = vpop.f32.mrf.mxu1 }
  0xcc   :  { %v252_v52 = vmul.f32 %v948_v35, %v230_v45  ;;  %v559_v56 = vmul.f32 %v948_v35, %v543_v51  ;;  %v229_v59 = vmax.f32 %v158_v47, 0.0  ;;  %v542_v1 = vmax.f32 %v471_v61, 0.0 }
  0xcd   :  { %v728_v50 = vpop.f32.mrf.mxu0  ;;  %v754_v10 = vpop.f32.mrf.mxu1 }
  0xce   :  { %572 = vadd.xlane.f32.xlu1 %v556_v48  ;;  %265 = vadd.xlane.f32.xlu0 %v249_v46  ;;  %v251_v2 = vmul.f32 %v948_v35, %v229_v59  ;;  %v232_v5 = vmax.f32 %v728_v50, 0.0  ;;  %v558_v8 = vmul.f32 %v948_v35, %v542_v1  ;;  %v545_v12 = vmax.f32 %v754_v10, 0.0 }
  0xcf   :  { %v168_v53 = vpop.f32.mrf.mxu0  ;;  %v481_v17 = vpop.f32.mrf.mxu1 }
  0xd0   :  { %v231_v54 = vmax.f32 %v168_v53, 0.0  ;;  %v254_v13 = vmul.f32 %v948_v35, %v232_v5  ;;  %v561_v19 = vmul.f32 %v948_v35, %v545_v12  ;;  %v544_v22 = vmax.f32 %v481_v17, 0.0 }
  0xd1   :  { %v731_v55 = vpop.f32.mrf.mxu0  ;;  %v757_v27 = vpop.f32.mrf.mxu1 }
  0xd2   :  { %271 = vadd.xlane.f32.xlu1 %v252_v52  ;;  %v253_v57 = vmul.f32 %v948_v35, %v231_v54  ;;  %v234_v24 = vmax.f32 %v731_v55, 0.0  ;;  %v560_v26 = vmul.f32 %v948_v35, %v544_v22  ;;  %v547_v28 = vmax.f32 %v757_v27, 0.0 }
  0xd3   :  { %v178_v58 = vpop.f32.mrf.mxu0  ;;  %v491_v30 = vpop.f32.mrf.mxu1 }
  0xd4   :  { %273 = vadd.xlane.f32.xlu0 %v253_v57  ;;  %v233_v60 = vmax.f32 %v178_v58, 0.0  ;;  %v256_v29 = vmul.f32 %v948_v35, %v234_v24  ;;  %v563_v31 = vmul.f32 %v948_v35, %v547_v28  ;;  %v546_v32 = vmax.f32 %v491_v30, 0.0 }
  0xd5   :  { %v734_v62 = vpop.f32.mrf.mxu0  ;;  %v760_v36 = vpop.f32.mrf.mxu1 }
  0xd6   :  { %578 = vadd.xlane.f32.xlu1 %v559_v56  ;;  %v255_v63 = vmul.f32 %v948_v35, %v233_v60  ;;  %v236_v33 = vmax.f32 %v734_v62, 0.0  ;;  %v562_v34 = vmul.f32 %v948_v35, %v546_v32  ;;  %v549_v37 = vmax.f32 %v760_v36, 0.0 }
  0xd7   :  { %v188_v0 = vpop.f32.mrf.mxu0  ;;  %v501_v39 = vpop.f32.mrf.mxu1 }
  0xd8   :  { %277 = vadd.xlane.f32.xlu0 %v255_v63  ;;  %v235_v3 = vmax.f32 %v188_v0, 0.0  ;;  %v258_v38 = vmul.f32 %v948_v35, %v236_v33  ;;  %v565_v40 = vmul.f32 %v948_v35, %v549_v37  ;;  %v548_v41 = vmax.f32 %v501_v39, 0.0 }
  0xd9   :  { %v737_v4 = vpop.f32.mrf.mxu0  ;;  %v763_v44 = vpop.f32.mrf.mxu1 }
  0xda   :  { %269 = vadd.xlane.f32.xlu1 %v251_v2  ;;  %v257_v6 = vmul.f32 %v948_v35, %v235_v3  ;;  %v238_v42 = vmax.f32 %v737_v4, 0.0  ;;  %v564_v43 = vmul.f32 %v948_v35, %v548_v41  ;;  %v551_v45 = vmax.f32 %v763_v44, 0.0 }
  0xdb   :  { %v198_v7 = vpop.f32.mrf.mxu0  ;;  %v511_v47 = vpop.f32.mrf.mxu1 }
  0xdc   :  { %281 = vadd.xlane.f32.xlu0 %v257_v6  ;;  %v237_v9 = vmax.f32 %v198_v7, 0.0  ;;  %v260_v46 = vmul.f32 %v948_v35, %v238_v42  ;;  %v567_v48 = vmul.f32 %v948_v35, %v551_v45  ;;  %v550_v49 = vmax.f32 %v511_v47, 0.0 }
  0xdd   :  { %v740_v11 = vpop.f32.mrf.mxu0  ;;  %v766_v52 = vpop.f32.mrf.mxu1 }
  0xde   :  { %576 = vadd.xlane.f32.xlu1 %v558_v8  ;;  %v259_v14 = vmul.f32 %v948_v35, %v237_v9  ;;  %v240_v50 = vmax.f32 %v740_v11, 0.0  ;;  %v566_v51 = vmul.f32 %v948_v35, %v550_v49  ;;  %v553_v53 = vmax.f32 %v766_v52, 0.0 }
  0xdf   :  { %v208_v15 = vpop.f32.mrf.mxu0  ;;  %v521_v55 = vpop.f32.mrf.mxu1 }
  0xe0   :  { %285 = vadd.xlane.f32.xlu0 %v259_v14  ;;  %v239_v16 = vmax.f32 %v208_v15, 0.0  ;;  %v262_v54 = vmul.f32 %v948_v35, %v240_v50  ;;  %v569_v56 = vmul.f32 %v948_v35, %v553_v53  ;;  %v552_v57 = vmax.f32 %v521_v55, 0.0 }
  0xe1   :  { %v743_v18 = vpop.f32.mrf.mxu0  ;;  %v769_v60 = vpop.f32.mrf.mxu1 }
  0xe2   :  { %275 = vadd.xlane.f32.xlu1 %v254_v13  ;;  %v261_v20 = vmul.f32 %v948_v35, %v239_v16  ;;  %v242_v58 = vmax.f32 %v743_v18, 0.0  ;;  %v568_v59 = vmul.f32 %v948_v35, %v552_v57  ;;  %v555_v61 = vmax.f32 %v769_v60, 0.0 }
  0xe3   :  { %v218_v21 = vpop.f32.mrf.mxu0  ;;  %v531_v63 = vpop.f32.mrf.mxu1 }
  0xe4   :  { %289 = vadd.xlane.f32.xlu0 %v261_v20  ;;  %v241_v23 = vmax.f32 %v218_v21, 0.0  ;;  %v264_v62 = vmul.f32 %v948_v35, %v242_v58  ;;  %v571_v0 = vmul.f32 %v948_v35, %v555_v61  ;;  %v554_v1 = vmax.f32 %v531_v63, 0.0 }
  0xe6   :  { %582 = vadd.xlane.f32.xlu1 %v561_v19  ;;  %v263_v25 = vmul.f32 %v948_v35, %v241_v23  ;;  %v570_v2 = vmul.f32 %v948_v35, %v554_v1 }
  0xe8   :  { %293 = vadd.xlane.f32.xlu0 %v263_v25 }
  0xea   :  { %580 = vadd.xlane.f32.xlu1 %v560_v26 }
  0xee   :  { %279 = vadd.xlane.f32.xlu1 %v256_v29 }
  0xf2   :  { %586 = vadd.xlane.f32.xlu1 %v563_v31 }
  0xf6   :  { %584 = vadd.xlane.f32.xlu1 %v562_v34 }
  0xfa   :  { %283 = vadd.xlane.f32.xlu1 %v258_v38 }
  0xfe   :  { %590 = vadd.xlane.f32.xlu1 %v565_v40 }
 0x102   :  { %588 = vadd.xlane.f32.xlu1 %v564_v43 }
 0x106   :  { %287 = vadd.xlane.f32.xlu1 %v260_v46 }
 0x10a   :  { %594 = vadd.xlane.f32.xlu1 %v567_v48 }
 0x10e   :  { %592 = vadd.xlane.f32.xlu1 %v566_v51 }
 0x112   :  { %291 = vadd.xlane.f32.xlu1 %v262_v54 }
 0x116   :  { %598 = vadd.xlane.f32.xlu1 %v569_v56 }
 0x11a   :  { %596 = vadd.xlane.f32.xlu1 %v568_v59 }
 0x11e   :  { %295 = vadd.xlane.f32.xlu1 %v264_v62 }
 0x122   :  { %602 = vadd.xlane.f32.xlu1 %v571_v0 }
 0x126   :  { %600 = vadd.xlane.f32.xlu1 %v570_v2 }
 0x153   :  { %v575_v3 = vpop.xlane.xlu1 %574  ;;  %v268_v4 = vpop.xlane.xlu0 %267 }
 0x157   :  { %v573_v5 = vpop.xlane.xlu1 %572  ;;  %v266_v6 = vpop.xlane.xlu0 %265 }
 0x158   :  { %297 = vxpose.xlu0.b32.start [1/16] (narrow) %v266_v6, 8 }
 0x159   :  { %604 = vxpose.xlu1.b32.start [1/16] (narrow) %v573_v5, 8 }
 0x15b   :  { %v272_v7 = vpop.xlane.xlu1 %271 }
 0x15c   :  { %298 = vxpose.xlu0.b32.cont [2/16] (narrow) %v268_v4, 8 }
 0x15d   :  { %605 = vxpose.xlu1.b32.cont [2/16] (narrow) %v575_v3, 8  ;;  %v274_v11 = vpop.xlane.xlu0 %273 }
 0x15f   :  { %v579_v8 = vpop.xlane.xlu1 %578 }
 0x161   :  { %v278_v13 = vpop.xlane.xlu0 %277 }
 0x163   :  { %v270_v9 = vpop.xlane.xlu1 %269 }
 0x164   :  { %299 = vxpose.xlu0.b32.cont [3/16] (narrow) %v270_v9, 8 }
 0x165   :  { %v282_v16 = vpop.xlane.xlu0 %281 }
 0x167   :  { %v577_v10 = vpop.xlane.xlu1 %576 }
 0x168   :  { %606 = vxpose.xlu1.b32.cont [3/16] (narrow) %v577_v10, 8  ;;  %300 = vxpose.xlu0.b32.cont [4/16] (narrow) %v272_v7, 8 }
 0x169   :  { %v286_v20 = vpop.xlane.xlu0 %285 }
 0x16b   :  { %v276_v12 = vpop.xlane.xlu1 %275 }
 0x16c   :  { %607 = vxpose.xlu1.b32.cont [4/16] (narrow) %v579_v8, 8  ;;  %301 = vxpose.xlu0.b32.cont [5/16] (narrow) %v274_v11, 8 }
 0x16d   :  { %v290_v24 = vpop.xlane.xlu0 %289 }
 0x16f   :  { %v583_v35 = vpop.xlane.xlu1 %582 }
 0x170   :  { %302 = vxpose.xlu0.b32.cont [6/16] (narrow) %v276_v12, 8 }
 0x171   :  { %v294_v28 = vpop.xlane.xlu0 %293 }
 0x173   :  { %v581_v14 = vpop.xlane.xlu1 %580 }
 0x174   :  { %608 = vxpose.xlu1.b32.cont [5/16] (narrow) %v581_v14, 8  ;;  %303 = vxpose.xlu0.b32.cont [7/16] (narrow) %v278_v13, 8 }
 0x177   :  { %v280_v15 = vpop.xlane.xlu1 %279 }
 0x178   :  { %609 = vxpose.xlu1.b32.cont [6/16] (narrow) %v583_v35, 8  ;;  %304 = vxpose.xlu0.b32.cont [8/16] (narrow) %v280_v15, 8 }
 0x17b   :  { %v587_v17 = vpop.xlane.xlu1 %586 }
 0x17c   :  { %305 = vxpose.xlu0.b32.cont [9/16] (narrow) %v282_v16, 8 }
 0x17f   :  { %v585_v18 = vpop.xlane.xlu1 %584 }
 0x180   :  { %610 = vxpose.xlu1.b32.cont [7/16] (narrow) %v585_v18, 8 }
 0x183   :  { %v284_v19 = vpop.xlane.xlu1 %283 }
 0x184   :  { %611 = vxpose.xlu1.b32.cont [8/16] (narrow) %v587_v17, 8  ;;  %306 = vxpose.xlu0.b32.cont [10/16] (narrow) %v284_v19, 8 }
 0x187   :  { %v591_v21 = vpop.xlane.xlu1 %590 }
 0x188   :  { %307 = vxpose.xlu0.b32.cont [11/16] (narrow) %v286_v20, 8 }
 0x18b   :  { %v589_v22 = vpop.xlane.xlu1 %588 }
 0x18c   :  { %612 = vxpose.xlu1.b32.cont [9/16] (narrow) %v589_v22, 8 }
 0x18f   :  { %v288_v23 = vpop.xlane.xlu1 %287 }
 0x190   :  { %613 = vxpose.xlu1.b32.cont [10/16] (narrow) %v591_v21, 8  ;;  %308 = vxpose.xlu0.b32.cont [12/16] (narrow) %v288_v23, 8 }
 0x193   :  { %v595_v25 = vpop.xlane.xlu1 %594 }
 0x194   :  { %309 = vxpose.xlu0.b32.cont [13/16] (narrow) %v290_v24, 8 }
 0x197   :  { %v593_v26 = vpop.xlane.xlu1 %592 }
 0x198   :  { %614 = vxpose.xlu1.b32.cont [11/16] (narrow) %v593_v26, 8 }
 0x19b   :  { %v292_v27 = vpop.xlane.xlu1 %291 }
 0x19c   :  { %615 = vxpose.xlu1.b32.cont [12/16] (narrow) %v595_v25, 8  ;;  %310 = vxpose.xlu0.b32.cont [14/16] (narrow) %v292_v27, 8 }
 0x19f   :  { %v599_v29 = vpop.xlane.xlu1 %598 }
 0x1a0   :  { %311 = vxpose.xlu0.b32.cont [15/16] (narrow) %v294_v28, 8 }
 0x1a3   :  { %v597_v30 = vpop.xlane.xlu1 %596 }
 0x1a4   :  { %616 = vxpose.xlu1.b32.cont [13/16] (narrow) %v597_v30, 8 }
 0x1a7   :  { %v296_v31 = vpop.xlane.xlu1 %295 }
 0x1a8   :  { %617 = vxpose.xlu1.b32.cont [14/16] (narrow) %v599_v29, 8  ;;  %312 = vxpose.xlu0.b32.end [16/16] (narrow) %v296_v31, 8 }
 0x1ab   :  { %v603_v32 = vpop.xlane.xlu1 %602 }
 0x1af   :  { %v601_v33 = vpop.xlane.xlu1 %600 }
 0x1b0   :  { %618 = vxpose.xlu1.b32.cont [15/16] (narrow) %v601_v33, 8 }
 0x1b4   :  { %619 = vxpose.xlu1.b32.end [16/16] (narrow) %v603_v32, 8 }
 0x1e8   :  { %v313_v34 = vpop.trf.xlu0 }
 0x1e9   :  { %329 = vst [vmem:[#allocation2] sm:$0x1] %v313_v34 }
 0x1f4   :  { %v620_v36 = vpop.trf.xlu1 }
 0x1f5   :  { %636 = vst [vmem:[#allocation2 + $0x1] sm:$0x1] %v620_v36 }
 0x1f6   :  { %782 = shalt.err (!%p779_p4)
}
 0x1f7   :  { %646 = dma.vmem_to_hbm [thread:$0]  %s644_s2, 32, %s988_s3, [#allocation3]  }
 0x1f8   :  { %791 = dma.done.wait [#allocation3], 32  }
 0x1f9   :  { %792 = vsyncadd [#allocation3], 4294967264 }
 0x1fa   :  { %650 = vsyncpa [#allocation3], 1 }

</bundles_post_ra>
